<compile_context>
chip_gen: v7x
topology: tpu7x:2x2x1
jax: 0.10.0
libtpu: 0.0.40
codegen_flags: <defaults>
</compile_context>

<pallas_src>
import functools

import jax
import jax.numpy as jnp
from jax.experimental import pallas as pl
from jax.experimental.pallas import tpu as pltpu

MAX_ACTION = 1.0
SIGMA_MAX = 2.0    # defined for parity with the reference; unconditioned sigma never clamps
SIGMA_MIN = -20.0


def _round_up(x, m):
    return ((x + m - 1) // m) * m


def _actor_mu_kernel(obs_ref, w1_ref, b1_ref, w2_ref, b2_ref,
                     wmu_ref, bmu_ref, mu_ref):
    # preprocess net: two Linear+ReLU layers (tianshou Net-style MLP).
    # MXU matmuls accumulate in f32; bias add / ReLU / tanh stay in f32
    # (VPU/EUP — v5e has no bf16 VPU, so no extra pack/unpack work).
    h1 = jnp.dot(obs_ref[...], w1_ref[...], preferred_element_type=jnp.float32)
    h1 = jnp.maximum(h1 + b1_ref[...], 0.0)
    h2 = jnp.dot(h1.astype(w2_ref.dtype), w2_ref[...],
                 preferred_element_type=jnp.float32)
    h2 = jnp.maximum(h2 + b2_ref[...], 0.0)

    # mu head: single Linear (hidden_sizes=()) followed by max_action * tanh.
    mu = jnp.dot(h2.astype(wmu_ref.dtype), wmu_ref[...],
                 preferred_element_type=jnp.float32) + bmu_ref[...]
    mu_ref[...] = (MAX_ACTION * jnp.tanh(mu)).astype(mu_ref.dtype)


def prepare_params(params, *, use_bf16=True):
    """One-time parameter prep, hoisted out of the per-call wrapper.

    * pads the mu head to a lane-dense 128-multiple output width,
    * optionally casts matmul operands to bf16 (v6e/v7x MXU-native; DMA bytes halved),
    * precomputes exp(sigma_param) — sigma does not depend on obs.
    """
    w1, b1, w2, b2, wmu, bmu, sigma_param = params
    H2, A = wmu.shape
    A_pad = _round_up(max(A, 128), 128)
    wmu_p = jnp.zeros((H2, A_pad), wmu.dtype).at[:, :A].set(wmu)
    bmu_p = jnp.zeros((1, A_pad), bmu.dtype).at[:, :A].set(bmu)

    mm_dtype = jnp.bfloat16 if use_bf16 else jnp.float32
    w1c = w1.astype(mm_dtype)
    w2c = w2.astype(mm_dtype)
    wmu_c = wmu_p.astype(mm_dtype)

    # nn.Parameter(torch.zeros(output_dim, 1)).view(1, -1) -> (1, A); exp() hoisted here.
    sigma_exp = jnp.exp(sigma_param.reshape(1, A)).astype(jnp.float32)

    return (w1c, b1.reshape(1, -1).astype(jnp.float32),
            w2c, b2.reshape(1, -1).astype(jnp.float32),
            wmu_c, bmu_p.astype(jnp.float32), sigma_exp)


@functools.partial(jax.jit, static_argnames=("block_b", "out_dtype"))
def attacked_actor_prob_forward(obs, prepared, *, block_b=1024, out_dtype=jnp.float32):
    """obs: [B, obs_dim] f32. Returns (mu [B, A], sigma [B, A])."""
    w1, b1, w2, b2, wmu, bmu, sigma_exp = prepared
    B, obs_dim = obs.shape
    H1 = w1.shape[1]
    H2 = w2.shape[1]
    A_pad = wmu.shape[1]
    A = sigma_exp.shape[1]

    # Batch tile: large (per-grid-step pipeline overhead dominates this tiny MLP),
    # forced to a multiple of 8 sublanes, and capped at ceil(B/2) so there are at
    # least 2 grid steps for v7x's two TensorCores (negligible cost on v5e/v6e).
    block_b = _round_up(max(int(block_b), 8), 8)
    half_b = _round_up(pl.cdiv(B, 2), 8)
    TB = max(8, min(block_b, half_b))
    B_pad = _round_up(B, TB)

    # Pad/cast obs inside this jitted wrapper so XLA fuses it with the producer.
    obs_c = obs.astype(w1.dtype)
    if B_pad != B:
        # Padded rows see bias-only activations; they are sliced off below — never
        # reduce over the padded kernel output directly.
        obs_c = jnp.zeros((B_pad, obs_dim), obs_c.dtype).at[:B].set(obs_c)

    in_bytes = jnp.dtype(w1.dtype).itemsize
    out_bytes = jnp.dtype(out_dtype).itemsize

    # Scoped-VMEM guard: only raise the limit when the tile actually needs it
    # (v5e default scoped limit is 16 MiB; v7x physical ceiling is 64 MiB).
    live_vmem = (2 * TB * (obs_dim * in_bytes + A_pad * out_bytes)   # double-buffered I/O tiles
                 + TB * (H1 + H2) * 4                                # h1/h2 f32 intermediates
                 + (w1.size + w2.size + wmu.size) * in_bytes
                 + (H1 + H2 + 2 * A_pad) * 4)
    vmem_limit = None
    if live_vmem > (14 << 20):
        vmem_limit = min(int(live_vmem) + (8 << 20), 100 << 20)

    flops = 2 * B_pad * (obs_dim * H1 + H1 * H2 + H2 * A_pad)
    bytes_accessed = (B_pad * obs_dim * in_bytes
                      + (w1.size + w2.size + wmu.size) * in_bytes
                      + (H1 + H2 + A_pad) * 4
                      + B_pad * A_pad * out_bytes)
    cost = pl.CostEstimate(flops=flops, transcendentals=B_pad * A_pad,
                           bytes_accessed=bytes_accessed)

    resident = lambda i: (0, 0)   # weights / biases stay in VMEM across grid steps
    tiled = lambda i: (i, 0)      # obs / mu walk the batch dimension

    mu_padded = pl.pallas_call(
        _actor_mu_kernel,
        out_shape=jax.ShapeDtypeStruct((B_pad, A_pad), out_dtype),
        grid=(B_pad // TB,),
        in_specs=[
            pl.BlockSpec((TB, obs_dim), tiled),
            pl.BlockSpec((obs_dim, H1), resident),
            pl.BlockSpec((1, H1), resident),
            pl.BlockSpec((H1, H2), resident),
            pl.BlockSpec((1, H2), resident),
            pl.BlockSpec((H2, A_pad), resident),
            pl.BlockSpec((1, A_pad), resident),
        ],
        out_specs=pl.BlockSpec((TB, A_pad), tiled),
        compiler_params=pltpu.CompilerParams(
            dimension_semantics=("parallel",),
            vmem_limit_bytes=vmem_limit),
        cost_estimate=cost,
    )(obs_c, w1, b1, w2, b2, wmu, bmu)

    # The slice / broadcast below live inside the same jitted program, so no extra
    # dispatch or standalone HBM pass is paid for them.
    mu = mu_padded[:B, :A]
    sigma = jnp.broadcast_to(sigma_exp, (B, A))
    return mu, sigma


def make_params(key, obs_dim, hidden1, hidden2, action_dim):
    k1, k2, k3 = jax.random.split(key, 3)
    scale = 0.1
    w1 = scale * jax.random.normal(k1, (obs_dim, hidden1), jnp.float32)
    b1 = jnp.zeros((1, hidden1), jnp.float32)
    w2 = scale * jax.random.normal(k2, (hidden1, hidden2), jnp.float32)
    b2 = jnp.zeros((1, hidden2), jnp.float32)
    wmu = scale * jax.random.normal(k3, (hidden2, action_dim), jnp.float32)
    bmu = jnp.zeros((1, action_dim), jnp.float32)
    # nn.Parameter(torch.zeros(output_dim, 1)) in the reference module
    sigma_param = jnp.zeros((action_dim, 1), jnp.float32)
    return (w1, b1, w2, b2, wmu, bmu, sigma_param)


if __name__ == "__main__":
    B, OBS_DIM, H1, H2, A = 8, 32, 64, 64, 4

    key = jax.random.PRNGKey(0)
    k_obs, k_par = jax.random.split(key)
    obs = jax.random.normal(k_obs, (B, OBS_DIM), jnp.float32)
    params = make_params(k_par, OBS_DIM, H1, H2, A)

    # plain-JAX reference of the noise='none' forward path
    w1, b1, w2, b2, wmu, bmu, sp = params
    h1 = jnp.maximum(obs @ w1 + b1, 0.0)
    h2 = jnp.maximum(h1 @ w2 + b2, 0.0)
    mu_ref = MAX_ACTION * jnp.tanh(h2 @ wmu + bmu)
    sigma_ref = jnp.exp(sp.reshape(1, -1) + jnp.zeros_like(mu_ref))

    # f32 operand path: bit-level parity with the reference
    prep_f32 = prepare_params(params, use_bf16=False)
    mu32, sigma32 = attacked_actor_prob_forward(obs, prep_f32)
    jax.block_until_ready((mu32, sigma32))
    assert mu32.shape == (B, A) and sigma32.shape == (B, A)
    assert jnp.allclose(mu32, mu_ref, atol=1e-5), "f32 mu mismatch"
    assert jnp.allclose(sigma32, sigma_ref, atol=1e-6), "sigma mismatch (f32)"

    # default bf16-operand path (v6e/v7x MXU-native; f32 accumulation) — looser tolerance
    prep_bf16 = prepare_params(params)   # use_bf16=True by default
    mu16, sigma16 = attacked_actor_prob_forward(obs, prep_bf16)
    jax.block_until_ready((mu16, sigma16))
    assert jnp.allclose(mu16, mu_ref, atol=2e-2), "bf16 mu mismatch"
    assert jnp.allclose(sigma16, sigma_ref, atol=1e-6), "sigma mismatch (bf16)"

    print("KERNEL_OK")
</pallas_src>

<mosaic_0001>
module attributes {stable_mosaic.version = 11 : i64} {
  func.func @_actor_mu_kernel(%arg0: i32, %arg1: memref<8x32xf32, #tpu.memory_space<vmem>>, %arg2: memref<32x64xf32, #tpu.memory_space<vmem>>, %arg3: memref<1x64xf32, #tpu.memory_space<vmem>>, %arg4: memref<64x64xf32, #tpu.memory_space<vmem>>, %arg5: memref<1x64xf32, #tpu.memory_space<vmem>>, %arg6: memref<64x128xf32, #tpu.memory_space<vmem>>, %arg7: memref<1x128xf32, #tpu.memory_space<vmem>>, %arg8: memref<8x128xf32, #tpu.memory_space<vmem>>) attributes {dimension_semantics = [#tpu.dimension_semantics<parallel>], iteration_bounds = array<i64: 1>, scalar_prefetch = 0 : i64, scratch_operands = 0 : i64, tpu.core_type = #tpu.core_type<tc>, window_params = [{transform_indices = @transform_0, window_bounds = array<i64: 8, 32>}, {pipeline_mode = #tpu.pipeline_mode<synchronous>, transform_indices = @transform_1, window_bounds = array<i64: 32, 64>}, {pipeline_mode = #tpu.pipeline_mode<synchronous>, transform_indices = @transform_2, window_bounds = array<i64: 1, 64>}, {pipeline_mode = #tpu.pipeline_mode<synchronous>, transform_indices = @transform_3, window_bounds = array<i64: 64, 64>}, {pipeline_mode = #tpu.pipeline_mode<synchronous>, transform_indices = @transform_4, window_bounds = array<i64: 1, 64>}, {pipeline_mode = #tpu.pipeline_mode<synchronous>, transform_indices = @transform_5, window_bounds = array<i64: 64, 128>}, {pipeline_mode = #tpu.pipeline_mode<synchronous>, transform_indices = @transform_6, window_bounds = array<i64: 1, 128>}, {transform_indices = @transform_7, window_bounds = array<i64: 8, 128>}]} {
    %c0 = arith.constant 0 : index
    %c0_0 = arith.constant 0 : index
    %0 = vector.load %arg1[%c0, %c0_0] : memref<8x32xf32, #tpu.memory_space<vmem>>, vector<8x32xf32>
    %c0_1 = arith.constant 0 : index
    %c0_2 = arith.constant 0 : index
    %1 = vector.load %arg2[%c0_1, %c0_2] : memref<32x64xf32, #tpu.memory_space<vmem>>, vector<32x64xf32>
    %cst = arith.constant dense<0.000000e+00> : vector<8x64xf32>
    %2 = tpu.matmul %0, %1, %cst {dimension_numbers = #tpu.dot_dimension_numbers<[1], [0], [0], [1], [0, 0, 1, 1], [], []>} : vector<8x32xf32>, vector<32x64xf32>, vector<8x64xf32> -> vector<8x64xf32>
    %c0_3 = arith.constant 0 : index
    %c0_4 = arith.constant 0 : index
    %3 = vector.load %arg3[%c0_3, %c0_4] : memref<1x64xf32, #tpu.memory_space<vmem>>, vector<1x64xf32>
    %4 = vector.broadcast %3 : vector<1x64xf32> to vector<8x64xf32>
    %5 = arith.addf %2, %4 : vector<8x64xf32>
    %cst_5 = arith.constant 0.000000e+00 : f32
    %6 = vector.broadcast %cst_5 : f32 to vector<8x64xf32>
    %7 = arith.maximumf %5, %6 : vector<8x64xf32>
    %c0_6 = arith.constant 0 : index
    %c0_7 = arith.constant 0 : index
    %8 = vector.load %arg4[%c0_6, %c0_7] : memref<64x64xf32, #tpu.memory_space<vmem>>, vector<64x64xf32>
    %cst_8 = arith.constant dense<0.000000e+00> : vector<8x64xf32>
    %9 = tpu.matmul %7, %8, %cst_8 {dimension_numbers = #tpu.dot_dimension_numbers<[1], [0], [0], [1], [0, 0, 1, 1], [], []>} : vector<8x64xf32>, vector<64x64xf32>, vector<8x64xf32> -> vector<8x64xf32>
    %c0_9 = arith.constant 0 : index
    %c0_10 = arith.constant 0 : index
    %10 = vector.load %arg5[%c0_9, %c0_10] : memref<1x64xf32, #tpu.memory_space<vmem>>, vector<1x64xf32>
    %11 = vector.broadcast %10 : vector<1x64xf32> to vector<8x64xf32>
    %12 = arith.addf %9, %11 : vector<8x64xf32>
    %cst_11 = arith.constant 0.000000e+00 : f32
    %13 = vector.broadcast %cst_11 : f32 to vector<8x64xf32>
    %14 = arith.maximumf %12, %13 : vector<8x64xf32>
    %c0_12 = arith.constant 0 : index
    %c0_13 = arith.constant 0 : index
    %15 = vector.load %arg6[%c0_12, %c0_13] : memref<64x128xf32, #tpu.memory_space<vmem>>, vector<64x128xf32>
    %cst_14 = arith.constant dense<0.000000e+00> : vector<8x128xf32>
    %16 = tpu.matmul %14, %15, %cst_14 {dimension_numbers = #tpu.dot_dimension_numbers<[1], [0], [0], [1], [0, 0, 1, 1], [], []>} : vector<8x64xf32>, vector<64x128xf32>, vector<8x128xf32> -> vector<8x128xf32>
    %c0_15 = arith.constant 0 : index
    %c0_16 = arith.constant 0 : index
    %17 = vector.load %arg7[%c0_15, %c0_16] : memref<1x128xf32, #tpu.memory_space<vmem>>, vector<1x128xf32>
    %18 = vector.broadcast %17 : vector<1x128xf32> to vector<8x128xf32>
    %19 = arith.addf %16, %18 : vector<8x128xf32>
    %20 = math.tanh %19 : vector<8x128xf32>
    %cst_17 = arith.constant 1.000000e+00 : f32
    %21 = vector.broadcast %cst_17 : f32 to vector<8x128xf32>
    %22 = arith.mulf %21, %20 : vector<8x128xf32>
    %c0_18 = arith.constant 0 : index
    %c0_19 = arith.constant 0 : index
    %23 = vector.load %arg8[%c0_18, %c0_19] : memref<8x128xf32, #tpu.memory_space<vmem>>, vector<8x128xf32>
    tpu.vector_store %arg8[%c0_18, %c0_19], %22 {strides = array<i32>} : memref<8x128xf32, #tpu.memory_space<vmem>>, vector<8x128xf32>,
    return
  }
  func.func @transform_0(%arg0: i32) -> (i32, i32) {
    %c0_i32 = arith.constant 0 : i32
    %c0_i32_0 = arith.constant 0 : i32
    return %arg0, %c0_i32 : i32, i32
  }
  func.func @transform_1(%arg0: i32) -> (i32, i32) {
    %c0_i32 = arith.constant 0 : i32
    %c0_i32_0 = arith.constant 0 : i32
    %c0_i32_1 = arith.constant 0 : i32
    return %c0_i32, %c0_i32_0 : i32, i32
  }
  func.func @transform_2(%arg0: i32) -> (i32, i32) {
    %c0_i32 = arith.constant 0 : i32
    %c0_i32_0 = arith.constant 0 : i32
    %c0_i32_1 = arith.constant 0 : i32
    return %c0_i32, %c0_i32_0 : i32, i32
  }
  func.func @transform_3(%arg0: i32) -> (i32, i32) {
    %c0_i32 = arith.constant 0 : i32
    %c0_i32_0 = arith.constant 0 : i32
    %c0_i32_1 = arith.constant 0 : i32
    return %c0_i32, %c0_i32_0 : i32, i32
  }
  func.func @transform_4(%arg0: i32) -> (i32, i32) {
    %c0_i32 = arith.constant 0 : i32
    %c0_i32_0 = arith.constant 0 : i32
    %c0_i32_1 = arith.constant 0 : i32
    return %c0_i32, %c0_i32_0 : i32, i32
  }
  func.func @transform_5(%arg0: i32) -> (i32, i32) {
    %c0_i32 = arith.constant 0 : i32
    %c0_i32_0 = arith.constant 0 : i32
    %c0_i32_1 = arith.constant 0 : i32
    return %c0_i32, %c0_i32_0 : i32, i32
  }
  func.func @transform_6(%arg0: i32) -> (i32, i32) {
    %c0_i32 = arith.constant 0 : i32
    %c0_i32_0 = arith.constant 0 : i32
    %c0_i32_1 = arith.constant 0 : i32
    return %c0_i32, %c0_i32_0 : i32, i32
  }
  func.func @transform_7(%arg0: i32) -> (i32, i32) {
    %c0_i32 = arith.constant 0 : i32
    %c0_i32_0 = arith.constant 0 : i32
    return %arg0, %c0_i32 : i32, i32
  }
}

</mosaic_0001>

<bundles_post_ra>
// kernel: attacked_actor_prob_forward.1
= control target key start
LH: loop header
LB: loop body
LE: loop exit
PB: predicated region body
PF: predicated region fallthrough
CT: control target
= control target key end

     0   :  { %12 = vsyncpa [#allocation3], 0  ;;  %s646_s0 = inlined_call_operand.vmem [shape: f32[8,32], index: 0, kind: input, shape index: {}]   ;;  %s647_s1 = inlined_call_operand.hbm [shape: f32[32,64], index: 1, kind: input, shape index: {}]   ;;  %s648_s2 = inlined_call_operand.vmem [shape: f32[1,64], index: 2, kind: input, shape index: {}]   ;;  %s649_s3 = inlined_call_operand.hbm [shape: f32[64,64], index: 3, kind: input, shape index: {}]   ;;  %s650_s4 = inlined_call_operand.vmem [shape: f32[1,64], index: 4, kind: input, shape index: {}]   ;;  %s651_s5 = inlined_call_operand.hbm [shape: f32[64,128], index: 5, kind: input, shape index: {}]   ;;  %s652_s6 = inlined_call_operand.vmem [shape: f32[1,128], index: 6, kind: input, shape index: {}]   ;;  %s653_s7 = inlined_call_operand.vmem [shape: f32[8,128], index: 7, kind: output, shape index: {}]  }
   0x1   :  { %13 = vsyncpa [#allocation5], 0  ;;  %s528_s24 = smov [#allocation4]   ;;  %s529_s26 = smov [#allocation2]  }
   0x2   :  { %s35_s25 = sshll.u32 %s528_s24, 4  ;;  %s21_s27 = sshll.u32 %s529_s26, 4  ;;  %s36_s25 = int_to_ptr.vmem [resolvable:$true] %s35_s25  ;;  %s576_s27 = int_to_ptr.vmem [resolvable:$true] %s21_s27 }
   0x3   :  { %s458_s30 = scalar_lea.hbm %s649_s3, 1024 }
   0x4   :  { %p459_p0 = scmp.ne.s32.totalorder %s649_s3, %s458_s30  ;;  %p462_p1 = scmp.lt.u32.totalorder %s458_s30, %s649_s3 }
   0x6   :  { %p464_p2 = pnand %p462_p1, %p459_p0 }
   0x8   :  { %467 = shalt.err (!%p464_p2)
}
   0x9   :  { %s468_s12 = scalar_lea.vmem %s36_s25, 1024  ;;  %p473_p4 = scmp.lt.s32.totalorder %s36_s25, %s36_s25 }
   0xa   :  { %p469_p3 = scmp.ne.s32.totalorder %s36_s25, %s468_s12  ;;  %p474_p5 = scmp.lt.s32.totalorder %s468_s12, %s468_s12 }
   0xc   :  { %p475_p6 = por %p474_p5, %p473_p4 }
   0xe   :  { %p476_p7 = pnand %p475_p6, %p469_p3 }
  0x10   :  { %479 = shalt.err (!%p476_p7)
}
  0x11   :  { %s530_s13 = smov 128   ;;  %s531_s14 = smov 8  }
  0x12   :  { %41 = dma.hbm_to_vmem [thread:$0]  %s649_s3, 1024, %s36_s25, [#allocation5], %s530_s13, %s530_s13, %s531_s14  }
  0x13   :  { %s480_s19 = scalar_lea.hbm %s647_s1, 512 }
  0x14   :  { %p481_p8 = scmp.ne.s32.totalorder %s647_s1, %s480_s19  ;;  %p484_p9 = scmp.lt.u32.totalorder %s480_s19, %s647_s1 }
  0x16   :  { %p486_p10 = pnand %p484_p9, %p481_p8 }
  0x18   :  { %489 = shalt.err (!%p486_p10)
}
  0x19   :  { %s490_s24 = scalar_lea.vmem %s576_s27, 512  ;;  %p495_p12 = scmp.lt.s32.totalorder %s576_s27, %s576_s27 }
  0x1a   :  { %p491_p11 = scmp.ne.s32.totalorder %s576_s27, %s490_s24  ;;  %p496_p13 = scmp.lt.s32.totalorder %s490_s24, %s490_s24 }
  0x1c   :  { %p497_p0 = por %p496_p13, %p495_p12 }
  0x1e   :  { %p498_p1 = pnand %p497_p0, %p491_p11 }
  0x20   :  { %501 = shalt.err (!%p498_p1)
}
  0x21   :  { %27 = dma.hbm_to_vmem [thread:$0]  %s647_s1, 512, %s576_s27, [#allocation3], %s530_s13, %s530_s13, %s531_s14  }
  0x22   :  { %s532_s26 = smov [#allocation6]   ;;  %s502_s8 = scalar_lea.hbm %s651_s5, 1024 }
  0x23   :  { %s49_s28 = sshll.u32 %s532_s26, 4  ;;  %p503_p2 = scmp.ne.s32.totalorder %s651_s5, %s502_s8  ;;  %s50_s28 = int_to_ptr.vmem [resolvable:$true] %s49_s28 }
  0x24   :  { %p506_p3 = scmp.lt.u32.totalorder %s502_s8, %s651_s5 }
  0x26   :  { %p508_p4 = pnand %p506_p3, %p503_p2 }
  0x28   :  { %511 = shalt.err (!%p508_p4)
}
  0x29   :  { %s512_s15 = scalar_lea.vmem %s50_s28, 1024  ;;  %p517_p6 = scmp.lt.s32.totalorder %s50_s28, %s50_s28 }
  0x2a   :  { %p513_p5 = scmp.ne.s32.totalorder %s50_s28, %s512_s15  ;;  %p518_p7 = scmp.lt.s32.totalorder %s512_s15, %s512_s15 }
  0x2c   :  { %p519_p8 = por %p518_p7, %p517_p6 }
  0x2e   :  { %p520_p9 = pnand %p519_p8, %p513_p5 }
  0x30   :  { %523 = shalt.err (!%p520_p9)
}
  0x31   :  { %55 = dma.hbm_to_vmem [thread:$0]  %s651_s5, 1024, %s50_s28, [#allocation5], %s530_s13, %s530_s13, %s531_s14  }
  0x32   :  { %524 = dma.done.wait [#allocation3], 512  }
  0x33   :  { %525 = vsyncadd [#allocation3], 4294966784 }
  0x34   :  { %526 = dma.done.wait [#allocation5], 2048  }
  0x35   :  { %527 = vsyncadd [#allocation5], 4294965248  ;;  %v533_v0 = vmov 0.0|0.0   ;;  %vm534_vm0 = vmmov 0   ;;  %v535_v1 = vmov 0.0   ;;  %v68_v2 = vld [vmem:[#allocation2] sm:$0xff] }
  0x36   :  { %418 = vmatprep.subr.bf16.mxu0 %v533_v0  ;;  %377 = vmatprep.mubr.msk.f32.mxu0 %vm534_vm0, %v535_v1  ;;  %v69_v3 = vld [vmem:[#allocation2 + $0x8] sm:$0xff]  ;;  %v70_v4 = vld [vmem:[#allocation2 + $0x10] sm:$0xff]  ;;  %v71_v6 = vld [vmem:[#allocation2 + $0x18] sm:$0xff]  ;;  %vm79_vm1 = vcmask 261120   ;;  %vm169_vm2 = vcmask 523264  }
  0x37   :  { %424 = vmatprep.subr.bf16.mxu1 %v533_v0  ;;  %396 = vmatprep.mubr.msk.f32.mxu1 %vm534_vm0, %v535_v1  ;;  %v419_v5 = vpack.c.bf16 %v69_v3, %v68_v2  ;;  %v154_v7 = vld [vmem:[#allocation4] sm:$0xff]  ;;  %v155_v8 = vld [vmem:[#allocation4 + $0x8] sm:$0xff]  ;;  %v156_v9 = vld [vmem:[#allocation4 + $0x10] sm:$0xff]  ;;  %v422_v11 = vpack.c.bf16 %v71_v6, %v70_v4 }
  0x38   :  { %v157_v10 = vld [vmem:[#allocation4 + $0x18] sm:$0xff]  ;;  %v425_v12 = vpack.c.bf16 %v155_v8, %v154_v7  ;;  %v158_v14 = vld [vmem:[#allocation4 + $0x20] sm:$0xff]  ;;  %v159_v15 = vld [vmem:[#allocation4 + $0x28] sm:$0xff] }
  0x39   :  { %420 = vmatpush3.bf16.msra.mxu0 %v419_v5  ;;  %v428_v13 = vpack.c.bf16 %v157_v10, %v156_v9  ;;  %v67_v16 = vld [vmem:[%s646_s0] sm:$0xff]  ;;  %v431_v17 = vpack.c.bf16 %v159_v15, %v158_v14  ;;  %v160_v18 = vld [vmem:[#allocation4 + $0x30] sm:$0xff]  ;;  %v161_v19 = vld [vmem:[#allocation4 + $0x38] sm:$0xff] }
  0x3a   :  { %421 = vmatprep.subr.bf16.mxu0 %v533_v0  ;;  %426 = vmatpush3.bf16.msra.mxu1 %v425_v12  ;;  %v434_v20 = vpack.c.bf16 %v161_v19, %v160_v18  ;;  %v244_v21 = vld [vmem:[#allocation6] sm:$0xff]  ;;  %v245_v22 = vld [vmem:[#allocation6 + $0x8] sm:$0xff]  ;;  %v246_v23 = vld [vmem:[#allocation6 + $0x10] sm:$0xff] }
  0x3b   :  { %427 = vmatprep.subr.bf16.mxu1 %v533_v0  ;;  %v437_v24 = vpack.c.bf16 %v245_v22, %v244_v21  ;;  %v247_v25 = vld [vmem:[#allocation6 + $0x18] sm:$0xff]  ;;  %v248_v27 = vld [vmem:[#allocation6 + $0x20] sm:$0xff]  ;;  %v249_v28 = vld [vmem:[#allocation6 + $0x28] sm:$0xff] }
  0x3c   :  { %v440_v26 = vpack.c.bf16 %v247_v25, %v246_v23  ;;  %v443_v29 = vpack.c.bf16 %v249_v28, %v248_v27  ;;  %v340_v30 = vld [vmem:[%s648_s2] ss:$0 sm:$0xff]  ;;  %v250_v35 = vld [vmem:[#allocation6 + $0x30] sm:$0xff]  ;;  %v251_v36 = vld [vmem:[#allocation6 + $0x38] sm:$0xff] }
  0x3d   :  { %423 = vmatpush3.bf16.msra.mxu0 %v422_v11  ;;  %v446_v37 = vpack.c.bf16 %v251_v36, %v250_v35  ;;  %v342_v38 = vld [vmem:[%s650_s4] ss:$0 sm:$0xff] }
  0x3e   :  { %436 = vmatprep.subr.bf16.mxu0 %v533_v0  ;;  %429 = vmatpush3.bf16.msra.mxu1 %v428_v13  ;;  %v344_v43 = vld [vmem:[%s652_s6] ss:$0 sm:$0xff] }
  0x3f   :  { %430 = vmatprep.subr.bf16.mxu1 %v533_v0 }
  0x40   :  { %378 = vmatmul.mubr.msk.f32.vlgmr.msra.gmra.mrb[0].mxu0 %vm79_vm1, %v67_v16 }
  0x41   :  { %415 = vmatprep.mubr.msk.f32.mxu0 %vm534_vm0, %v535_v1  ;;  %438 = vmatpush3.bf16.msra.mxu0 %v437_v24 }
  0x42   :  { %432 = vmatpush3.bf16.msra.mxu1 %v431_v17  ;;  %439 = vmatprep.subr.bf16.mxu0 %v533_v0 }
  0x43   :  { %433 = vmatprep.subr.bf16.mxu1 %v533_v0 }
  0x45   :  { %441 = vmatpush3.bf16.msra.mxu0 %v440_v26 }
  0x46   :  { %435 = vmatpush3.bf16.msra.mxu1 %v434_v20  ;;  %442 = vmatprep.subr.bf16.mxu0 %v533_v0 }
  0x49   :  { %444 = vmatpush3.bf16.msra.mxu0 %v443_v29 }
  0x4a   :  { %445 = vmatprep.subr.bf16.mxu0 %v533_v0 }
  0x4d   :  { %447 = vmatpush3.bf16.msra.mxu0 %v446_v37 }
 0x113   :  { %v149_v31 = vpop.f32.mrb[0].mxu0 }
 0x114   :  { %v150_v32 = vadd.f32 %v340_v30, %v149_v31  ;;  %v379_v33 = vpop.f32.mrb[1].mxu0 }
 0x116   :  { %v153_v34 = vmax.f32 %v150_v32, 0.0 }
 0x118   :  { %397 = vmatmul.mubr.msk.f32.vlgmr.msra.gmra.mrb[0].mxu1 %vm169_vm2, %v153_v34 }
 0x1eb   :  { %v239_v39 = vpop.f32.mrb[0].mxu1 }
 0x1ec   :  { %v240_v40 = vadd.f32 %v342_v38, %v239_v39  ;;  %v398_v41 = vpop.f32.mrb[1].mxu1 }
 0x1ee   :  { %v243_v42 = vmax.f32 %v240_v40, 0.0 }
 0x1f0   :  { %416 = vmatmul.mubr.msk.f32.vlgmr.msra.gmra.mrb[2].mxu0 %vm169_vm2, %v243_v42 }
 0x2c3   :  { %v328_v44 = vpop.f32.mrb[2].mxu0 }
 0x2c4   :  { %v329_v45 = vadd.f32 %v344_v43, %v328_v44  ;;  %v417_v46 = vpop.f32.mrb[3].mxu0 }
 0x2c6   :  { %456 = vtanh.f32 %v329_v45 }
 0x2d0   :  { %v457_v47 = vpop.eup %456 }
 0x2d1   :  { %333 = vst [vmem:[%s653_s7] sm:$0xff] %v457_v47 }
 0x2d2   :  { %338 = vsyncpa [#allocation3], 1 }
 0x2d3   :  { %339 = vsyncpa [#allocation5], 1 }

</bundles_post_ra>
